<compile_context>
chip_gen: v7x
topology: tpu7x:2x2x1
jax: 0.10.0
libtpu: 0.0.40
codegen_flags: <defaults>
</compile_context>

<pallas_src>
import functools

import jax
import jax.numpy as jnp
from jax.experimental import pallas as pl
from jax.experimental.pallas import tpu as pltpu


def _vmem_budgets():
    """(tile_budget_bytes, vmem_limit_bytes), sized per TPU generation."""
    try:
        vmem_bytes = int(pltpu.get_tpu_info().vmem_capacity_bytes)
    except Exception:  # unknown part / interpret mode -> conservative defaults
        vmem_bytes = 0
    if vmem_bytes >= 100 * 1024 * 1024:
        # v5e / v6e: 128 MiB physical VMEM per TensorCore.
        return 72 * 1024 * 1024, 96 * 1024 * 1024
    if vmem_bytes > 0:
        # v7x: 64 MiB per TensorCore; leave headroom for internal scratch.
        return 30 * 1024 * 1024, 48 * 1024 * 1024
    return 24 * 1024 * 1024, 32 * 1024 * 1024


def _align_rows(t, n_rows):
    if t >= n_rows:
        return n_rows            # full-extent dims are always legal
    if t >= 128:
        return (t // 128) * 128  # keeps the diagonal BlockSpec lane-aligned
    return max(8, (t // 8) * 8)  # sublane-aligned fallback


def _pick_row_tile(n_rows, n_cols, itemsize, budget_bytes, target=1024):
    """Largest aligned row tile whose working set fits the VMEM budget."""
    # Streaming temporaries: the f32 cast feeding exp->sum is consumed once,
    # so budget ~1 full-width f32 temp for f32 inputs, ~2 for bf16.
    extra = 4 if itemsize >= 4 else 8
    tm = _align_rows(min(target, n_rows), n_rows)
    for _ in range(8):
        # 2 double-buffered (tm, N) input blocks + streaming temps
        # + 2 double-buffered (tm, tm) diagonal blocks + (tm, tm) f32 select.
        per_row = n_cols * (2 * itemsize + extra) + tm * (2 * itemsize + 4)
        cap = _align_rows(max(8, budget_bytes // per_row), n_rows)
        if cap >= tm:
            break
        tm = cap
    return tm


def _cross_en_kernel(*refs, tm, n_rows, n_cols, diag_mode, has_tail):
    if diag_mode == "block_spec":
        sim_ref, diag_ref, out_ref = refs
    else:
        sim_ref, out_ref = refs

    # ---- softmax statistics over the full-width row block ------------------
    x = sim_ref[...]                                             # (tm, N)
    m = jnp.max(x, axis=-1, keepdims=True).astype(jnp.float32)   # (tm, 1)
    # f32 cast feeds a single exp->sum chain: streams per-vreg, no (tm, N)
    # f32 temporary is materialized for bf16 inputs.
    denom = jnp.sum(jnp.exp(x.astype(jnp.float32) - m),
                    axis=-1, keepdims=True)                      # (tm, 1)

    # ---- diagonal logits ----------------------------------------------------
    diag_off = 0
    if diag_mode == "block_spec":
        # Aligned (tm, tm) diagonal block delivered by its own BlockSpec.
        w = diag_ref[...].astype(jnp.float32)                    # (tm, tm)
    elif diag_mode == "whole_block":
        # Single-block case: the window is the resident block itself.
        w = x.astype(jnp.float32)                                # (tm, N), tm == N
    else:  # "dyn_slice": tm < 128 fallback; slice the resident block.
        row_start = pl.program_id(0) * tm
        if has_tail:
            col_start = jnp.minimum(row_start, n_cols - tm)      # stay in bounds
            diag_off = row_start - col_start
        else:
            col_start = pl.multiple_of(row_start, tm)            # aligned start
        w = sim_ref[:, pl.ds(col_start, tm)].astype(jnp.float32)

    win = w.shape[-1]
    r_loc = jax.lax.broadcasted_iota(jnp.int32, (tm, win), 0)
    c_loc = jax.lax.broadcasted_iota(jnp.int32, (tm, win), 1)
    # Select (not arithmetic mask), so block-padding garbage never propagates.
    x_ii = jnp.sum(jnp.where((r_loc + diag_off) == c_loc, w, 0.0),
                   axis=-1, keepdims=True)                       # (tm, 1)

    # nce_loss = -log(softmax_ii + 1e-8); everything below is (tm, 1)-sized.
    p_ii = jnp.exp(x_ii - m) / denom
    nll = -jnp.log(p_ii + 1e-8)

    if has_tail:
        rows = pl.program_id(0) * tm + jax.lax.broadcasted_iota(
            jnp.int32, (tm, 1), 0)
        nll = jnp.where(rows < n_rows, nll, 0.0)                 # padded rows -> 0

    out_ref[...] = nll


def cross_en(sim_matrix, *, tm=None):
    """Pallas equivalent of CrossEn().forward(sim_matrix) -> scalar loss."""
    n_rows, n_cols = sim_matrix.shape
    assert n_rows == n_cols, "CrossEn expects a square similarity matrix"

    itemsize = jnp.dtype(sim_matrix.dtype).itemsize
    tile_budget, vmem_limit = _vmem_budgets()
    if tm is None:
        tm = _pick_row_tile(n_rows, n_cols, itemsize, tile_budget)
    tm = _align_rows(int(min(tm, n_rows)), n_rows)
    has_tail = (n_rows % tm) != 0
    num_tiles = pl.cdiv(n_rows, tm)

    if tm == n_rows:
        diag_mode = "whole_block"
    elif tm % 128 == 0:
        diag_mode = "block_spec"
    else:
        diag_mode = "dyn_slice"

    kernel = functools.partial(
        _cross_en_kernel, tm=tm, n_rows=n_rows, n_cols=n_cols,
        diag_mode=diag_mode, has_tail=has_tail)

    in_specs = [pl.BlockSpec((tm, n_cols), lambda i: (i, 0))]
    operands = [sim_matrix]
    if diag_mode == "block_spec":
        # Aligned diagonal window; re-reads only tm/N of the matrix from HBM.
        in_specs.append(pl.BlockSpec((tm, tm), lambda i: (i, i)))
        operands.append(sim_matrix)

    nll = pl.pallas_call(
        kernel,
        out_shape=jax.ShapeDtypeStruct((n_rows, 1), jnp.float32),
        grid_spec=pltpu.PrefetchScalarGridSpec(
            num_scalar_prefetch=0,
            grid=(num_tiles,),
            in_specs=in_specs,
            # Each step writes its own (tm, 1) NLL block -> no accumulator.
            out_specs=pl.BlockSpec((tm, 1), lambda i: (i, 0)),
        ),
        compiler_params=pltpu.CompilerParams(
            # Independent row blocks: lets v7x megacore split the grid across
            # both TensorCores.
            dimension_semantics=("parallel",),
            vmem_limit_bytes=vmem_limit,
        ),
    )(*operands)
    # Mean over the true rows; padded tail rows were clipped/zeroed.
    return jnp.sum(nll[:, 0]) / jnp.float32(n_rows)


def _reference(sim_matrix):
    pt = jax.nn.softmax(sim_matrix.astype(jnp.float32), axis=-1) + 1e-8
    return jnp.mean(-jnp.diagonal(jnp.log(pt)))


if __name__ == "__main__":
    key = jax.random.PRNGKey(0)

    # 1) Small single-block case (whole_block diagonal path).
    sim = jax.random.normal(key, (16, 16), dtype=jnp.float32) * 3.0
    loss = jax.block_until_ready(cross_en(sim))
    ref = _reference(sim)
    assert jnp.allclose(loss, ref, atol=1e-5, rtol=1e-5), (loss, ref)

    # 2) dyn_slice fallback with a tail block (tm < 128, N % tm != 0).
    sim2 = jax.random.normal(jax.random.PRNGKey(0), (20, 20), jnp.float32) * 3.0
    loss2 = jax.block_until_ready(cross_en(sim2, tm=8))
    assert jnp.allclose(loss2, _reference(sim2), atol=1e-5, rtol=1e-5), loss2

    # 3) dyn_slice fallback, no tail (aligned pl.multiple_of window start).
    sim3 = jax.random.normal(jax.random.PRNGKey(1), (32, 32), jnp.float32) * 3.0
    loss3 = jax.block_until_ready(cross_en(sim3, tm=16))
    assert jnp.allclose(loss3, _reference(sim3), atol=1e-5, rtol=1e-5), loss3

    # 4) block_spec diagonal path, exact tiling (multi-block, 128-row tiles).
    sim4 = jax.random.normal(jax.random.PRNGKey(2), (256, 256), jnp.float32)
    loss4 = jax.block_until_ready(cross_en(sim4, tm=128))
    assert jnp.allclose(loss4, _reference(sim4), atol=1e-5, rtol=1e-5), loss4

    # 5) block_spec diagonal path with a tail block (320 = 2*128 + 64).
    sim5 = jax.random.normal(jax.random.PRNGKey(3), (320, 320), jnp.float32)
    loss5 = jax.block_until_ready(cross_en(sim5, tm=128))
    assert jnp.allclose(loss5, _reference(sim5), atol=1e-5, rtol=1e-5), loss5

    # 6) bf16 input (halves HBM traffic; softmax stats still in f32).
    sim6 = (jax.random.normal(jax.random.PRNGKey(4), (128, 128), jnp.float32)
            * 3.0).astype(jnp.bfloat16)
    loss6 = jax.block_until_ready(cross_en(sim6))
    assert jnp.allclose(loss6, _reference(sim6), atol=1e-4, rtol=1e-4), loss6

    print("KERNEL_OK")
</pallas_src>

<mosaic_0001>
module attributes {stable_mosaic.version = 11 : i64} {
  func.func @_cross_en_kernel(%arg0: i32, %arg1: memref<16x16xf32, #tpu.memory_space<vmem>>, %arg2: memref<16x1xf32, #tpu.memory_space<vmem>>) attributes {dimension_semantics = [#tpu.dimension_semantics<parallel>], iteration_bounds = array<i64: 1>, scalar_prefetch = 0 : i64, scratch_operands = 0 : i64, tpu.core_type = #tpu.core_type<tc>, window_params = [{transform_indices = @transform_0, window_bounds = array<i64: 16, 16>}, {transform_indices = @transform_1, window_bounds = array<i64: 16, 1>}]} {
    %c0 = arith.constant 0 : index
    %c0_0 = arith.constant 0 : index
    %0 = vector.load %arg1[%c0, %c0_0] : memref<16x16xf32, #tpu.memory_space<vmem>>, vector<16x16xf32>
    %cst = arith.constant dense<0xFF800000> : vector<16xf32>
    %1 = vector.multi_reduction <maximumf>, %0, %cst [1] : vector<16x16xf32> to vector<16xf32>
    %2 = vector.shape_cast %1 : vector<16xf32> to vector<16x1xf32>
    %3 = vector.broadcast %2 : vector<16x1xf32> to vector<16x16xf32>
    %4 = arith.subf %0, %3 : vector<16x16xf32>
    %5 = math.exp %4 : vector<16x16xf32>
    %cst_1 = arith.constant dense<0.000000e+00> : vector<16xf32>
    %6 = vector.multi_reduction <add>, %5, %cst_1 [1] : vector<16x16xf32> to vector<16xf32>
    %7 = vector.shape_cast %6 : vector<16xf32> to vector<16x1xf32>
    %8 = tpu.iota {dimensions = array<i32: 0>} : vector<16x16xi32>
    %9 = tpu.iota {dimensions = array<i32: 1>} : vector<16x16xi32>
    %c0_i32 = arith.constant 0 : i32
    %10 = vector.broadcast %c0_i32 : i32 to vector<16x16xi32>
    %11 = arith.addi %8, %10 : vector<16x16xi32>
    %12 = arith.cmpi eq, %11, %9 : vector<16x16xi32>
    %cst_2 = arith.constant 0.000000e+00 : f32
    %13 = vector.broadcast %cst_2 : f32 to vector<16x16xf32>
    %14 = arith.select %12, %0, %13 : vector<16x16xi1>, vector<16x16xf32>
    %cst_3 = arith.constant dense<0.000000e+00> : vector<16xf32>
    %15 = vector.multi_reduction <add>, %14, %cst_3 [1] : vector<16x16xf32> to vector<16xf32>
    %16 = vector.shape_cast %15 : vector<16xf32> to vector<16x1xf32>
    %17 = arith.subf %16, %2 : vector<16x1xf32>
    %18 = math.exp %17 : vector<16x1xf32>
    %19 = arith.divf %18, %7 : vector<16x1xf32>
    %cst_4 = arith.constant 9.99999993E-9 : f32
    %20 = vector.broadcast %cst_4 : f32 to vector<16x1xf32>
    %21 = arith.addf %19, %20 : vector<16x1xf32>
    %22 = math.log %21 : vector<16x1xf32>
    %cst_5 = arith.constant 0.000000e+00 : f32
    %23 = vector.broadcast %cst_5 : f32 to vector<16x1xf32>
    %24 = arith.subf %23, %22 : vector<16x1xf32>
    %c0_6 = arith.constant 0 : index
    %c0_7 = arith.constant 0 : index
    %25 = vector.load %arg2[%c0_6, %c0_7] : memref<16x1xf32, #tpu.memory_space<vmem>>, vector<16x1xf32>
    tpu.vector_store %arg2[%c0_6, %c0_7], %24 {strides = array<i32>} : memref<16x1xf32, #tpu.memory_space<vmem>>, vector<16x1xf32>,
    return
  }
  func.func @transform_0(%arg0: i32) -> (i32, i32) {
    %c0_i32 = arith.constant 0 : i32
    %c0_i32_0 = arith.constant 0 : i32
    return %arg0, %c0_i32 : i32, i32
  }
  func.func @transform_1(%arg0: i32) -> (i32, i32) {
    %c0_i32 = arith.constant 0 : i32
    %c0_i32_0 = arith.constant 0 : i32
    return %arg0, %c0_i32 : i32, i32
  }
}

</mosaic_0001>

<bundles_post_ra>
// kernel: tpu_custom_call.1
= control target key start
LH: loop header
LB: loop body
LE: loop exit
PB: predicated region body
PF: predicated region fallthrough
CT: control target
= control target key end

     0   :  { %6 = vsyncpa [#allocation3], 0  ;;  %s127_s6 = smov [#allocation2]   ;;  %s164_s0 = inlined_call_operand.hbm [shape: f32[16,16], index: 0, kind: input, shape index: {}]   ;;  %s165_s1 = inlined_call_operand.vmem [shape: f32[16,1], index: 1, kind: output, shape index: {}]  }
   0x1   :  { %s12_s7 = sshll.u32 %s127_s6, 4  ;;  %s103_s10 = scalar_lea.hbm %s164_s0, 256  ;;  %s13_s7 = int_to_ptr.vmem [resolvable:$true] %s12_s7 }
   0x2   :  { %p104_p0 = scmp.ne.s32.totalorder %s164_s0, %s103_s10  ;;  %p107_p1 = scmp.lt.u32.totalorder %s103_s10, %s164_s0 }
   0x4   :  { %p109_p2 = pnand %p107_p1, %p104_p0 }
   0x6   :  { %112 = shalt.err (!%p109_p2)
}
   0x7   :  { %s113_s15 = scalar_lea.vmem %s13_s7, 256  ;;  %p118_p4 = scmp.lt.s32.totalorder %s13_s7, %s13_s7 }
   0x8   :  { %p114_p3 = scmp.ne.s32.totalorder %s13_s7, %s113_s15  ;;  %p119_p5 = scmp.lt.s32.totalorder %s113_s15, %s113_s15 }
   0xa   :  { %p120_p6 = por %p119_p5, %p118_p4 }
   0xc   :  { %p121_p7 = pnand %p120_p6, %p114_p3 }
   0xe   :  { %124 = shalt.err (!%p121_p7)
}
   0xf   :  { %s128_s16 = smov 128   ;;  %s129_s17 = smov 8  }
  0x10   :  { %18 = dma.hbm_to_vmem [thread:$0]  %s164_s0, 256, %s13_s7, [#allocation3], %s128_s16, %s128_s16, %s129_s17  }
  0x11   :  { %125 = dma.done.wait [#allocation3], 256  }
  0x12   :  { %126 = vsyncadd [#allocation3], 4294967040  ;;  %v43_v0 = vlaneseq  ;;  %vm24_vm0 = vcmask 130048   ;;  %v22_v4 = vld [vmem:[#allocation2] sm:$0xff]  ;;  %v23_v5 = vld [vmem:[#allocation2 + $0x8] sm:$0xff]  ;;  %vm76_vm3 = vcmask 7168  }
  0x13   :  { %v25_v6 = vsel %vm24_vm0, %v22_v4, -inf  ;;  %v28_v10 = vsel %vm24_vm0, %v23_v5, -inf }
  0x14   :  { %v44_v1 = vshrl.u32 %v43_v0, 7  ;;  %v47_v2 = vand.u32 127, %v43_v0  ;;  %26 = vmax.xlane.f32.xlu0 %v25_v6 }
  0x16   :  { %v45_v3 = vadd.s32 8, %v44_v1  ;;  %vm48_vm1 = vcmp.eq.s32.totalorder %v44_v1, %v47_v2 }
  0x17   :  { %v50_v7 = vsel %vm48_vm1, %v22_v4, 0.0 }
  0x18   :  { %vm49_vm2 = vcmp.eq.s32.totalorder %v45_v3, %v47_v2  ;;  %v52_v9 = vsel %vm24_vm0, %v50_v7, 0.0  ;;  %29 = vmax.xlane.f32.xlu0 %v28_v10 }
  0x19   :  { %v51_v8 = vsel %vm49_vm2, %v23_v5, 0.0  ;;  %53 = vadd.xlane.f32.xlu1 %v52_v9 }
  0x1a   :  { %v55_v11 = vsel %vm24_vm0, %v51_v8, 0.0 }
  0x1d   :  { %56 = vadd.xlane.f32.xlu1 %v55_v11 }
  0xa1   :  { %v27_v12 = vpop.xlane.xlu0 %26 }
  0xa2   :  { %v31_v13 = vsub.f32 %v22_v4, %v27_v12 }
  0xa4   :  { %v33_v14 = vmul.f32 1.442695, %v31_v13 }
  0xa5   :  { %v30_v15 = vpop.xlane.xlu0 %29 }
  0xa6   :  { %87 = vpow2.f32 %v33_v14  ;;  %v32_v16 = vsub.f32 %v23_v5, %v30_v15  ;;  %v54_v22 = vpop.xlane.xlu1 %53 }
  0xa7   :  { %v58_v23 = vsub.f32 %v54_v22, %v27_v12 }
  0xa8   :  { %v35_v17 = vmul.f32 1.442695, %v32_v16 }
  0xa9   :  { %v60_v25 = vmul.f32 1.442695, %v58_v23 }
  0xaa   :  { %89 = vpow2.f32 %v35_v17  ;;  %v57_v24 = vpop.xlane.xlu1 %56 }
  0xab   :  { %v59_v26 = vsub.f32 %v57_v24, %v30_v15  ;;  %91 = vpow2.f32 %v60_v25 }
  0xad   :  { %v62_v27 = vmul.f32 1.442695, %v59_v26 }
  0xb0   :  { %v88_v18 = vpop.eup %87 }
  0xb1   :  { %v37_v19 = vsel %vm24_vm0, %v88_v18, 0.0 }
  0xb2   :  { %38 = vadd.xlane.f32.xlu0 %v37_v19 }
  0xb4   :  { %v90_v20 = vpop.eup %89 }
  0xb5   :  { %v40_v21 = vsel %vm24_vm0, %v90_v20, 0.0  ;;  %v92_v30 = vpop.eup %91 }
  0xb6   :  { %41 = vadd.xlane.f32.xlu1 %v40_v21 }
 0x13f   :  { %v39_v28 = vpop.xlane.xlu0 %38 }
 0x140   :  { %93 = vrcp.f32 %v39_v28 }
 0x141   :  { %95 = vpow2.f32 %v62_v27 }
 0x143   :  { %v42_v29 = vpop.xlane.xlu1 %41 }
 0x144   :  { %97 = vrcp.f32 %v42_v29 }
 0x14a   :  { %v94_v31 = vpop.eup %93 }
 0x14b   :  { %v65_v32 = vmul.f32 %v94_v31, %v92_v30  ;;  %v96_v33 = vpop.eup %95 }
 0x14d   :  { %v68_v34 = vadd.f32 1e-08, %v65_v32 }
 0x14e   :  { %v98_v35 = vpop.eup %97 }
 0x14f   :  { %99 = vlog2.f32 %v68_v34  ;;  %v67_v36 = vmul.f32 %v98_v35, %v96_v33 }
 0x151   :  { %v69_v37 = vadd.f32 1e-08, %v67_v36 }
 0x153   :  { %101 = vlog2.f32 %v69_v37 }
 0x159   :  { %v100_v38 = vpop.eup %99 }
 0x15a   :  { %v71_v39 = vmul.f32 0.6931472, %v100_v38 }
 0x15c   :  { %v74_v40 = vsub.f32 0.0, %v71_v39 }
 0x15d   :  { %v102_v41 = vpop.eup %101 }
 0x15e   :  { %77 = vst.msk [vmem:[%s165_s1] sm:$0xff] %vm76_vm3, %v74_v40  ;;  %v73_v42 = vmul.f32 0.6931472, %v102_v41 }
 0x160   :  { %v75_v43 = vsub.f32 0.0, %v73_v42 }
 0x162   :  { %78 = vst.msk [vmem:[%s165_s1 + $0x8] sm:$0xff] %vm76_vm3, %v75_v43 }
 0x163   :  { %83 = vsyncpa [#allocation3], 1 }

</bundles_post_ra>
